<compile_context>
chip_gen: v7x
topology: tpu7x:2x2x1
jax: 0.10.0
libtpu: 0.0.40
codegen_flags: <defaults>
</compile_context>

<pallas_src>
import jax
import jax.numpy as jnp
from jax.experimental import pallas as pl
from jax.experimental.pallas import tpu as pltpu

_MiB = 1024 * 1024


def _round_up(x, m):
    return -(-x // m) * m


def _fc_kernel(w_ref, b_ref, x_ref, o_ref):
    # w_ref: (TCO, C_in) stream dtype   b_ref: (TCO, 1) f32
    # x_ref: (C_in, TL)  stream dtype   o_ref: (TCO, TL) out dtype
    y = jnp.dot(w_ref[...], x_ref[...], preferred_element_type=jnp.float32)  # MXU
    o_ref[...] = jnp.maximum(y + b_ref[...], 0.0).astype(o_ref.dtype)        # f32 VPU


def _fc_kernel_batched(w_ref, b_ref, x_ref, o_ref):
    # Small-L path: x_ref (BN, C_in, L), o_ref (BN, C_out, L); BN is small/static.
    for b in range(x_ref.shape[0]):
        y = jnp.dot(w_ref[...], x_ref[b], preferred_element_type=jnp.float32)
        o_ref[b] = jnp.maximum(y + b_ref[...], 0.0).astype(o_ref.dtype)


def _vmem_limit(est_bytes):
    return int(min(50 * _MiB, max(16 * _MiB, est_bytes + est_bytes // 2 + 4 * _MiB)))


def feature_conv(x, w, gamma1, beta1, mean1, var1,
                 gamma2, beta2, mean2, var2, eps=1e-5, tl=2048, out_dtype=None):
    """Eval-mode FeatureConv.  x: (N, C_in, L); w: (C_out, C_in, 1) Conv1d weight.

    Output dtype defaults to x.dtype.  Pass bf16 x for the memory-bound fast
    path (f32 accumulation inside the kernel either way).
    """
    N, C_in, L = x.shape
    C_out = w.shape[0]
    out_dtype = x.dtype if out_dtype is None else out_dtype

    # ---- Fold BN1 / BN2 (eval mode) into the 1x1-conv weight + one bias (f32). ----
    f32 = jnp.float32
    inv1 = 1.0 / jnp.sqrt(var1.astype(f32) + eps)
    inv2 = 1.0 / jnp.sqrt(var2.astype(f32) + eps)
    s1 = gamma1.astype(f32) * inv1                       # (C_in,)
    b1 = beta1.astype(f32) - mean1.astype(f32) * s1      # (C_in,)
    s2 = gamma2.astype(f32) * inv2                       # (C_out,)
    b2 = beta2.astype(f32) - mean2.astype(f32) * s2      # (C_out,)
    w2d = w.reshape(C_out, C_in).astype(f32)
    w_fold = (s2[:, None] * w2d) * s1[None, :]           # (C_out, C_in), f32 math
    bias = (b2 + s2 * (w2d @ b1)).reshape(C_out, 1)      # (C_out, 1), stays f32

    stream_dtype = x.dtype                                # bf16 in -> bf16 streamed
    w_fold = w_fold.astype(stream_dtype)
    in_isz = jnp.dtype(stream_dtype).itemsize
    out_isz = jnp.dtype(out_dtype).itemsize

    # ---------------- small-L path (L < 128): batch several N per step ----------------
    if L < 128:
        bn = max(1, min(N, 16, 256 // max(L, 1)))
        if N > 1 and pl.cdiv(N, bn) < 2:
            bn = max(1, -(-N // 2))       # keep >=2 grid steps (v7x has 2 TCs)
        grid = (pl.cdiv(N, bn),)          # ragged last N block handled by Pallas
        est = 2 * (bn * C_in * L * in_isz + bn * C_out * L * out_isz
                   + C_out * C_in * in_isz + C_out * 4)
        return pl.pallas_call(
            _fc_kernel_batched,
            out_shape=jax.ShapeDtypeStruct((N, C_out, L), out_dtype),
            grid_spec=pltpu.PrefetchScalarGridSpec(
                num_scalar_prefetch=0,
                grid=grid,
                in_specs=[
                    pl.BlockSpec((C_out, C_in), lambda nb: (0, 0)),   # resident weight
                    pl.BlockSpec((C_out, 1), lambda nb: (0, 0)),      # resident bias
                    pl.BlockSpec((bn, C_in, L), lambda nb: (nb, 0, 0)),
                ],
                out_specs=pl.BlockSpec((bn, C_out, L), lambda nb: (nb, 0, 0)),
            ),
            compiler_params=pltpu.CompilerParams(
                dimension_semantics=("parallel",),
                vmem_limit_bytes=_vmem_limit(est)),
        )(w_fold, bias, x)

    # ---------------- main path (L >= 128): NCL-native, lane-dense L tiles ----------------
    # C_out tiling escape hatch: keep (double-buffered) weight under ~12 MiB.
    if 2 * C_out * C_in * in_isz > 12 * _MiB:
        tco = max(8, ((12 * _MiB // (2 * C_in * in_isz)) // 8) * 8)
        tco = min(tco, C_out)
    else:
        tco = C_out
    grid_co = pl.cdiv(C_out, tco)

    # L tile: largest 128-multiple keeping double-buffered x/out tiles <= ~24 MiB
    # (sized for v7x's 64 MiB VMEM), capped by the tl argument.
    per_col = 2 * (C_in * in_isz + tco * out_isz)
    tl_fit = max(128, (24 * _MiB // per_col) // 128 * 128)
    tl_eff = max(128, min(max(128, (tl // 128) * 128), tl_fit))

    if L <= tl_eff:
        if N == 1 and grid_co == 1 and L > 128:
            tl_eff = _round_up(-(-L // 2), 128)   # >=2 L steps: feed both v7x TCs
        else:
            tl_eff = L                            # full-extent block, no constraint
    grid_l = pl.cdiv(L, tl_eff)                   # ragged last L block: masked store

    est = (2 * (C_in * tl_eff * in_isz + tco * tl_eff * out_isz)
           + 2 * (tco * C_in * in_isz + tco * 4))

    return pl.pallas_call(
        _fc_kernel,
        out_shape=jax.ShapeDtypeStruct((N, C_out, L), out_dtype),
        grid_spec=pltpu.PrefetchScalarGridSpec(
            num_scalar_prefetch=0,
            grid=(N, grid_co, grid_l),            # L innermost: weight fetched once per (n, co)
            in_specs=[
                pl.BlockSpec((tco, C_in), lambda n, co, l: (co, 0)),      # weight
                pl.BlockSpec((tco, 1), lambda n, co, l: (co, 0)),         # bias (f32)
                pl.BlockSpec((None, C_in, tl_eff), lambda n, co, l: (n, 0, l)),  # x, batch squeezed
            ],
            out_specs=pl.BlockSpec((None, tco, tl_eff), lambda n, co, l: (n, co, l)),
        ),
        compiler_params=pltpu.CompilerParams(
            dimension_semantics=("parallel", "parallel", "parallel"),
            vmem_limit_bytes=_vmem_limit(est)),
    )(w_fold, bias, x)


def feature_conv_ref(x, w, gamma1, beta1, mean1, var1,
                     gamma2, beta2, mean2, var2, eps=1e-5):
    """Pure-JAX reference matching PyTorch eval-mode FeatureConv (f32)."""
    x = x.astype(jnp.float32)
    inv1 = 1.0 / jnp.sqrt(var1 + eps)
    xb = (x - mean1[None, :, None]) * (gamma1 * inv1)[None, :, None] + beta1[None, :, None]
    y = jnp.einsum('oi,nil->nol', w[:, :, 0].astype(jnp.float32), xb)
    inv2 = 1.0 / jnp.sqrt(var2 + eps)
    y = (y - mean2[None, :, None]) * (gamma2 * inv2)[None, :, None] + beta2[None, :, None]
    return jnp.maximum(y, 0.0)


def _make_params(key, N, C_in, C_out, L):
    kx, kw, kg1, kb1, km1, kv1, kg2, kb2, km2, kv2 = jax.random.split(key, 10)
    x = jax.random.normal(kx, (N, C_in, L), dtype=jnp.float32)
    w = jax.random.normal(kw, (C_out, C_in, 1), dtype=jnp.float32) * 0.5
    gamma1 = 1.0 + 0.1 * jax.random.normal(kg1, (C_in,), dtype=jnp.float32)
    beta1 = 0.1 * jax.random.normal(kb1, (C_in,), dtype=jnp.float32)
    mean1 = 0.1 * jax.random.normal(km1, (C_in,), dtype=jnp.float32)
    var1 = 1.0 + 0.1 * jax.random.uniform(kv1, (C_in,), dtype=jnp.float32)
    gamma2 = 1.0 + 0.1 * jax.random.normal(kg2, (C_out,), dtype=jnp.float32)
    beta2 = 0.1 * jax.random.normal(kb2, (C_out,), dtype=jnp.float32)
    mean2 = 0.1 * jax.random.normal(km2, (C_out,), dtype=jnp.float32)
    var2 = 1.0 + 0.1 * jax.random.uniform(kv2, (C_out,), dtype=jnp.float32)
    return x, w, gamma1, beta1, mean1, var1, gamma2, beta2, mean2, var2


if __name__ == "__main__":
    key = jax.random.PRNGKey(0)
    k1, k2, k3 = jax.random.split(key, 3)

    # Case 1: small module-consistent shape -> small-L (batched) path, exact f32.
    N, C_in, C_out, L = 2, 4, 8, 16
    args = _make_params(k1, N, C_in, C_out, L)
    out = jax.block_until_ready(feature_conv(*args))
    ref = feature_conv_ref(*args)
    assert out.shape == (N, C_out, L)
    assert jnp.allclose(out, ref, atol=1e-4, rtol=1e-4), "mismatch (small-L path)"

    # Case 2: tiled main path with ragged last L block (no pad, masked store), f32.
    N2, C2_in, C2_out, L2 = 2, 4, 8, 300
    args2 = _make_params(k2, N2, C2_in, C2_out, L2)
    out2 = jax.block_until_ready(feature_conv(*args2, tl=128))
    ref2 = feature_conv_ref(*args2)
    assert out2.shape == (N2, C2_out, L2)
    assert jnp.allclose(out2, ref2, atol=1e-4, rtol=1e-4), "mismatch (ragged L path)"

    # Case 3: bf16 streaming + N==1 split into 2 L tiles (v7x both-TC path).
    N3, C3_in, C3_out, L3 = 1, 8, 16, 384
    args3 = _make_params(k3, N3, C3_in, C3_out, L3)
    x3_bf16 = args3[0].astype(jnp.bfloat16)
    args3_bf16 = (x3_bf16,) + args3[1:]
    out3 = jax.block_until_ready(feature_conv(*args3_bf16))
    ref3 = feature_conv_ref(*args3_bf16)   # reference from the same bf16-quantized x
    assert out3.shape == (N3, C3_out, L3)
    assert jnp.allclose(out3.astype(jnp.float32), ref3, atol=6e-2, rtol=6e-2), \
        "mismatch (bf16 path)"

    print("KERNEL_OK")
</pallas_src>

<mosaic_0001>
module attributes {stable_mosaic.version = 11 : i64} {
  func.func @_fc_kernel_batched(%arg0: i32, %arg1: memref<8x4xf32, #tpu.memory_space<vmem>>, %arg2: memref<8x1xf32, #tpu.memory_space<vmem>>, %arg3: memref<1x4x16xf32, #tpu.memory_space<vmem>>, %arg4: memref<1x8x16xf32, #tpu.memory_space<vmem>>) attributes {dimension_semantics = [#tpu.dimension_semantics<parallel>], iteration_bounds = array<i64: 2>, scalar_prefetch = 0 : i64, scratch_operands = 0 : i64, tpu.core_type = #tpu.core_type<tc>, window_params = [{pipeline_mode = #tpu.pipeline_mode<synchronous>, transform_indices = @transform_0, window_bounds = array<i64: 8, 4>}, {pipeline_mode = #tpu.pipeline_mode<synchronous>, transform_indices = @transform_1, window_bounds = array<i64: 8, 1>}, {transform_indices = @transform_2, window_bounds = array<i64: 1, 4, 16>}, {transform_indices = @transform_3, window_bounds = array<i64: 1, 8, 16>}]} {
    %c0 = arith.constant 0 : index
    %c0_0 = arith.constant 0 : index
    %0 = vector.load %arg1[%c0, %c0_0] : memref<8x4xf32, #tpu.memory_space<vmem>>, vector<8x4xf32>
    %c0_1 = arith.constant 0 : index
    %c0_2 = arith.constant 0 : index
    %c0_3 = arith.constant 0 : index
    %1 = vector.load %arg3[%c0_1, %c0_2, %c0_3] : memref<1x4x16xf32, #tpu.memory_space<vmem>>, vector<1x4x16xf32>
    %2 = vector.shape_cast %1 : vector<1x4x16xf32> to vector<4x16xf32>
    %cst = arith.constant dense<0.000000e+00> : vector<8x16xf32>
    %3 = tpu.matmul %0, %2, %cst {dimension_numbers = #tpu.dot_dimension_numbers<[1], [0], [0], [1], [0, 0, 1, 1], [], []>} : vector<8x4xf32>, vector<4x16xf32>, vector<8x16xf32> -> vector<8x16xf32>
    %c0_4 = arith.constant 0 : index
    %c0_5 = arith.constant 0 : index
    %4 = vector.load %arg2[%c0_4, %c0_5] : memref<8x1xf32, #tpu.memory_space<vmem>>, vector<8x1xf32>
    %5 = vector.broadcast %4 : vector<8x1xf32> to vector<8x16xf32>
    %6 = arith.addf %3, %5 : vector<8x16xf32>
    %cst_6 = arith.constant 0.000000e+00 : f32
    %7 = vector.broadcast %cst_6 : f32 to vector<8x16xf32>
    %8 = arith.maximumf %6, %7 : vector<8x16xf32>
    %c0_7 = arith.constant 0 : index
    %c0_8 = arith.constant 0 : index
    %c0_9 = arith.constant 0 : index
    %9 = vector.load %arg4[%c0_7, %c0_8, %c0_9] : memref<1x8x16xf32, #tpu.memory_space<vmem>>, vector<1x8x16xf32>
    %10 = vector.shape_cast %9 : vector<1x8x16xf32> to vector<8x16xf32>
    %11 = vector.shape_cast %8 : vector<8x16xf32> to vector<1x8x16xf32>
    tpu.vector_store %arg4[%c0_7, %c0_8, %c0_9], %11 {strides = array<i32>} : memref<1x8x16xf32, #tpu.memory_space<vmem>>, vector<1x8x16xf32>,
    return
  }
  func.func @transform_0(%arg0: i32) -> (i32, i32) {
    %c0_i32 = arith.constant 0 : i32
    %c0_i32_0 = arith.constant 0 : i32
    %c0_i32_1 = arith.constant 0 : i32
    return %c0_i32, %c0_i32_0 : i32, i32
  }
  func.func @transform_1(%arg0: i32) -> (i32, i32) {
    %c0_i32 = arith.constant 0 : i32
    %c0_i32_0 = arith.constant 0 : i32
    %c0_i32_1 = arith.constant 0 : i32
    return %c0_i32, %c0_i32_0 : i32, i32
  }
  func.func @transform_2(%arg0: i32) -> (i32, i32, i32) {
    %c0_i32 = arith.constant 0 : i32
    %c0_i32_0 = arith.constant 0 : i32
    %c0_i32_1 = arith.constant 0 : i32
    return %arg0, %c0_i32, %c0_i32_0 : i32, i32, i32
  }
  func.func @transform_3(%arg0: i32) -> (i32, i32, i32) {
    %c0_i32 = arith.constant 0 : i32
    %c0_i32_0 = arith.constant 0 : i32
    %c0_i32_1 = arith.constant 0 : i32
    return %arg0, %c0_i32, %c0_i32_0 : i32, i32, i32
  }
}

</mosaic_0001>

<bundles_post_ra>
// kernel: tpu_custom_call.1
= control target key start
LH: loop header
LB: loop body
LE: loop exit
PB: predicated region body
PF: predicated region fallthrough
CT: control target
= control target key end

     0   :  { %8 = vsyncpa [#allocation3], 0  ;;  %s584_s0 = inlined_call_operand.vmem [shape: f32[8,4], index: 0, kind: input, shape index: {}]   ;;  %s585_s1 = inlined_call_operand.vmem [shape: f32[8,1], index: 1, kind: input, shape index: {}]   ;;  %s586_s2 = inlined_call_operand.vmem [shape: f32[2,4,16], index: 2, kind: input, shape index: {}]   ;;  %s587_s3 = inlined_call_operand.hbm [shape: f32[2,8,16], index: 3, kind: output, shape index: {}]  }
   0x1   :  { %10 = vsyncpa [#allocation3 + $0x1], 0  ;;  %s478_s12 = smov 0   ;;  %s480_s13 = smov 0  }
   0x2   :  { %s482_s14 = smov 0   ;;  %s484_s15 = smov 0  }
   0x3 LB: > { %s499_s16 = sadd.s32 4294967295, %s452_s15   ;;  %s328_s17 = sadd.s32 4294967294, %s452_s15   ;;  %s452_s15 = sphi %s484_s15, %s593_s15   ;;  %s448_s14 = sphi %s482_s14, %s592_s14   ;;  %s444_s13 = sphi %s480_s13, %s591_s13   ;;  %s440_s12 = sphi %s478_s12, %s590_s12  }
   0x4   : > { %s503_s18 = sadd.s32 1, %s452_s15   ;;  %s91_s19 = sadd.s32 1, %s448_s14 }
   0x5   : > { %s88_s20 = ssub.s32 %s452_s15, %s503_s18  ;;  %p101_p0 = scmp.ne.s32.totalorder %s448_s14, %s444_s13 }
   0x6   : > { %p89_p1 = scmp.eq.s32.totalorder %s88_s20, 0  ;;  %p102_p2 = scmp.eq.s32.totalorder %s499_s16, 1 }
   0x7   : > { %p107_p3 = scmp.ne.s32.totalorder %s444_s13, %s440_s12  ;;  %p108_p4 = scmp.eq.s32.totalorder %s328_s17, 1 }
   0x8   : > { %s514_s21 = scalar_select %p89_p1, %s448_s14, %s91_s19  }
   0x9   : > { %p516_p5 = por %p102_p2, %p101_p0  ;;  %p520_p6 = por %p108_p4, %p107_p3 }
   0xa   : > { %p331_p7 = scmp.ge.s32.totalorder %s452_s15, 1  ;;  %p139_p8 = scmp.lt.s32.totalorder %s452_s15, 3 }
   0xc   : > { %p140_p9 = pnand %p331_p7, %p139_p8 }
   0xd   : > { %p162_p10 = scmp.lt.s32.totalorder (!%p140_p9), %s499_s16, 1  ;;  %v454_v0 = vmov (!%p140_p9), 0.0   ;;  %vm455_vm0 = vmmov (!%p140_p9), 0   ;;  %v168_v1 = vld [vmem:[%s585_s1] sm:$0xff] (!%p140_p9)  ;;  %v456_v2 = vmov (!%p140_p9), 0   ;;  %vm178_vm1 = vcmask (!%p140_p9), 1043456  }
   0xe   : > { %143 = sbr.rel (%p140_p9) target bundleno = 257 (0x101), region = 32  ;;  %342 = vmatprep.subr.mxu0 (!%p140_p9), %v454_v0  ;;  %344 = vmatprep.mubr.msk.f32.mxu0 (!%p140_p9), %vm455_vm0, %v454_v0  ;;  %v166_v3 = vld [vmem:[%s584_s0] sm:$0xff] (!%p140_p9)  ;;  %vm174_vm2 = vcmask (!%p140_p9), 31744   ;;  %s159_s6 = sand.u32 (!%p140_p9), 1, %s444_s13   ;;  %vm253_vm3 = vcmask (!%p140_p9), 130048  }
   0xf   : > { %389 = vset.pattern.permute.xlu0 (!%p140_p9), %v456_v2  ;;  %s332_s7 = sshll.u32 (!%p140_p9), %s159_s6, 3  ;;  %s337_s8 = sshll.u32 (!%p140_p9), %s499_s16, 7 }
  0x10   : > { %171 = vperm.xlu0 (!%p140_p9), %389, %v168_v1   ;;  %s161_s9 = scalar_lea.vmem (!%p140_p9), [#allocation2], %s332_s7  ;;  %s542_s19 = scalar_lea.hbm (!%p140_p9), %s587_s3, %s337_s8 }
  0x11   : > { %s269_s10 = sshll.u32 (!%p140_p9), %s161_s9, 4  ;;  %s256_s20 = scalar_lea.sflag (!%p140_p9), [#allocation3], %s159_s6  ;;  %s544_s10 = int_to_ptr.vmem [resolvable:$true] %s269_s10 }
  0x12   : > { %s390_s24 = scalar_lea.vmem (!%p140_p9), %s544_s10, 128 }
  0x13   : > { %p391_p11 = scmp.ne.s32.totalorder (!%p140_p9), %s544_s10, %s390_s24 }
  0x15   : > { %s163_s26 = scalar_select %p162_p10, %s499_s16, 1 }
  0x16   : > { %p392_p12 = pnand %p391_p11, %p516_p5  ;;  %s457_s16 = smov [#allocation2]  }
  0x17   : > { %s333_s27 = sshll.u32 %s163_s26, 2  ;;  %s394_s25 = sshll.u32 %s457_s16, 4  ;;  %s395_s25 = int_to_ptr.vmem [resolvable:$false] %s394_s25 }
  0x18   : > { %s165_s30 = scalar_lea.vmem %s586_s2, %s333_s27  ;;  %p393_p13 = pneg %p392_p12 }
  0x19   : > { %v167_v4 = vld [vmem:[%s165_s30] sm:$0xf]  ;;  %s396_s26 = scalar_lea.vmem %s395_s25, 256  ;;  %p397_p0 = scmp.lt.s32.totalorder %s544_s10, %s395_s25 }
  0x1a   : > { %343 = vmatpush3.msk.msra.mxu0 %vm178_vm1, %v167_v4  ;;  %p398_p1 = scmp.lt.s32.totalorder %s396_s26, %s390_s24 }
  0x1b   : > { %345 = vmatmul.mubr.msk.f32.vlgmr.msra.gmra.mrb[0].mxu0 %vm174_vm2, %v166_v3 }
  0x1c   : > { %p399_p2 = por %p398_p1, %p397_p0 }
  0x1e   : > { %p400_p3 = pnand %p399_p2, %p393_p13 }
  0x8f   : > { %v172_v5 = vpop.permute.xlu0 %171 }
  0xee   : > { %v248_v6 = vpop.f32.mrb[0].mxu0 }
  0xef   : > { %v249_v7 = vadd.f32 %v248_v6, %v172_v5  ;;  %v346_v8 = vpop.f32.mrb[1].mxu0 }
  0xf1   : > { %v252_v9 = vmax.f32 %v249_v7, 0.0 }
  0xf3   : > { %254 = vst.msk [vmem:[%s161_s9] sm:$0xff] %vm253_vm3, %v252_v9 }
  0xf4   : > { %403 = shalt.err (!%p400_p3)
}
  0xf5   : > { %s404_s27 = scalar_lea.hbm %s542_s19, 128  ;;  %s408_s30 = scalar_lea.hbm %s587_s3, 256 }
  0xf6   : > { %p405_p4 = scmp.ne.s32.totalorder %s542_s19, %s404_s27  ;;  %p409_p9 = scmp.lt.u32.totalorder %s542_s19, %s587_s3 }
  0xf7   : > { %p410_p10 = scmp.lt.u32.totalorder %s408_s30, %s404_s27  ;;  %p412_p12 = scmp.lt.u32.totalorder %s404_s27, %s542_s19 }
  0xf8   : > { %p406_p7 = pnand %p405_p4, %p516_p5 }
  0xf9   : > { %p411_p11 = por %p410_p10, %p409_p9 }
  0xfa   : > { %p407_p8 = pneg %p406_p7 }
  0xfb   : > { %p413_p13 = por %p412_p12, %p411_p11 }
  0xfd   : > { %p414_p0 = pnand %p413_p13, %p407_p8 }
  0xff   : > { %417 = shalt.err (!%p414_p0)
}
 0x100   : > { %347 = dma.vmem_to_hbm [thread:$0]  (%p516_p5), %s544_s10, 128, %s542_s19, %s256_s20  }
 0x101 PF: > { %p353_p1 = scmp.ge.s32.totalorder %s452_s15, 2  ;;  %s281_s6 = sand.u32 1, %s440_s12  }
 0x102   : > { %s282_s7 = scalar_lea.sflag [#allocation3], %s281_s6 }
 0x103   : > { %p350_p2 = pnand %p353_p1, %p520_p6 }
 0x105   : > { %435 = dma.done.wait (!%p350_p2), %s282_s7, 128  }
 0x106   : > { %437 = vsyncadd (!%p350_p2), %s282_s7, 4294967168  ;;  %p13_p3 = scmp.ge.s32.totalorder %s503_s18, 4   ;;  %s590_s12 = smov %s444_s13 }
 0x107   : > { %s591_s13 = smov %s448_s14  ;;  %s592_s14 = smov %s514_s21 }
 0x108   : > { %s593_s15 = smov %s503_s18  ;;  %15 = sbr.rel (!%p13_p3) target bundleno = 3 (0x3), region = 67 }
 0x10f   :  { %287 = vsyncpa [#allocation3], 1 }
 0x110   :  { %289 = vsyncpa [#allocation3 + $0x1], 1 }

</bundles_post_ra>
